<compile_context>
chip_gen: v7x
topology: tpu7x:2x2x1
jax: 0.10.0
libtpu: 0.0.40
codegen_flags: <defaults>
</compile_context>

<pallas_src>
import functools
import math

import jax
import jax.numpy as jnp
import numpy as np
from jax.experimental import pallas as pl
from jax.experimental.pallas import tpu as pltpu


# ---------------------------------------------------------------------------
# Fused Pallas kernel
# ---------------------------------------------------------------------------

def _lse(x, axis):
    m = jnp.max(x, axis=axis, keepdims=True)
    return jnp.log(jnp.sum(jnp.exp(x - m), axis=axis, keepdims=True)) + m


def _fused_sinkhorn_kernel(qa_ref, ka_ref, vr_ref,
                           wqk_ref, bqk_ref, wvo_ref, bvo_ref,
                           out_ref, pw_la_ref,
                           *, scale_over_tau, tau, iters, matmul_dtype):
    # qa_ref: (Bblk, Tb, E)   raw query, bucket-mean-aggregated in the wrapper
    # ka_ref: (Bblk, Sb, E)   raw key,   bucket-mean-aggregated in the wrapper
    # vr_ref: (Bblk, Sb, F)   raw value, pre-reshaped to F = bucket*E
    # wqk_ref: (2E, E)  = [Wq^T ; Wk^T],  bqk_ref: (2, E)
    # wvo_ref: (2F, F)  = [blockdiag(Wv^T) ; blockdiag(Wo^T)], bvo_ref: (2, F)
    f32 = jnp.float32
    md = matmul_dtype
    Bblk, Tb, E = qa_ref.shape
    Sb = ka_ref.shape[1]
    F = vr_ref.shape[2]

    wqk = wqk_ref[...]
    bqk = bqk_ref[...].astype(f32)
    wvo = wvo_ref[...]
    bvo = bvo_ref[...].astype(f32)
    wq, wk = wqk[:E].astype(md), wqk[E:].astype(md)
    bq, bk = bqk[0:1], bqk[1:2]                      # (1, E)
    wv, wo = wvo[:F].astype(md), wvo[F:].astype(md)
    bv, bo = bvo[0:1], bvo[1:2]                      # (1, F)

    # Projections on the already-aggregated inputs; M = Bblk*Tb / Bblk*Sb rows.
    qa = qa_ref[...].astype(md).reshape(Bblk * Tb, E)
    ka = ka_ref[...].astype(md).reshape(Bblk * Sb, E)
    vr = vr_ref[...].astype(md).reshape(Bblk * Sb, F)

    q = (jnp.dot(qa, wq, preferred_element_type=f32) + bq).reshape(Bblk, Tb, E)
    k = (jnp.dot(ka, wk, preferred_element_type=f32) + bk).reshape(Bblk, Sb, E)
    v = (jnp.dot(vr, wv, preferred_element_type=f32) + bv).reshape(Bblk, Sb, F)

    # energy_fn == 'dot': fold scaling and 1/tau into one multiply.
    # (Sb is tiny here; any transpose Mosaic inserts on k is negligible XLU work.)
    x = jnp.einsum('bte,bse->bts', q.astype(md), k.astype(md),
                   preferred_element_type=f32) * scale_over_tau   # (Bblk,Tb,Sb)

    # log_alpha = energy * scaling = x * tau  (stored f32, sliced store, no concat)
    pw_la_ref[:, Tb:, :] = (x * tau).astype(pw_la_ref.dtype)

    # gumbel_sinkhorn with noise_factor == 0 (eval): log_sinkhorn_norm, all f32.
    for _ in range(iters):
        x = x - _lse(x, axis=-1)     # row normalization
        x = x - _lse(x, axis=-2)     # column normalization
    p = jnp.exp(x)
    pw_la_ref[:, :Tb, :] = p.astype(pw_la_ref.dtype)

    # attn = p @ v_agg (dropout p=0); out-proj with block-diagonal Wo keeps the
    # (Tb, bucket*E) layout -> lane-dense output block (last dim = F = 128).
    attn = jnp.einsum('bts,bsf->btf', p.astype(md), v.astype(md),
                      preferred_element_type=f32)                 # (Bblk,Tb,F)
    out = (jnp.dot(attn.astype(md).reshape(Bblk * Tb, F), wo,
                   preferred_element_type=f32) + bo)
    out_ref[...] = out.reshape(Bblk, Tb, F).astype(out_ref.dtype)


def _pick_block_b(B):
    """Largest divisor of B that keeps the grid length >= 2 (megacore on v7x)."""
    if B <= 2:
        return 1
    for d in range(B // 2, 0, -1):
        if B % d == 0:
            return d
    return 1


def sinkhorn_attention_forward(query, key, value, params, *,
                               bucket_size, tau=0.75, iters=8,
                               matmul_dtype=jnp.float32, block_b=None):
    """query: (T, B, E), key/value: (S, B, E)  (Time x Batch x Channel)."""
    T, B, E = query.shape
    S = key.shape[0]
    assert T % bucket_size == 0 and S % bucket_size == 0  # no tail padding needed
    Tb, Sb = T // bucket_size, S // bucket_size
    F = bucket_size * E
    scaling = E ** (-0.5)
    dt = query.dtype
    if block_b is None:
        block_b = _pick_block_b(B)
    assert B % block_b == 0

    # One-time layout plumbing in XLA (cheap, O(B*S*E)); everything heavy fused:
    #  - bucket-mean of RAW q/k (linearity: mean(x)@W + b == mean(x@W + b))
    #  - value pre-reshaped to (B, Sb, bucket*E)
    q_agg = jnp.transpose(query, (1, 0, 2)).reshape(B, Tb, bucket_size, E).mean(axis=2)
    k_agg = jnp.transpose(key, (1, 0, 2)).reshape(B, Sb, bucket_size, E).mean(axis=2)
    v_rsh = jnp.transpose(value, (1, 0, 2)).reshape(B, Sb, F)

    # Packed weights: [Wq^T ; Wk^T] and block-diagonal [Wv^T ; Wo^T] (built once).
    w_qk = jnp.concatenate([params["wq"].T, params["wk"].T], axis=0)      # (2E, E)
    b_qk = jnp.stack([params["bq"], params["bk"]], axis=0)                # (2, E)
    eye_b = jnp.eye(bucket_size, dtype=jnp.float32)
    wv_bd = jnp.kron(eye_b, params["wv"].T)                               # (F, F)
    wo_bd = jnp.kron(eye_b, params["wo"].T)                               # (F, F)
    w_vo = jnp.concatenate([wv_bd, wo_bd], axis=0)                        # (2F, F)
    b_vo = jnp.stack([jnp.tile(params["bv"], bucket_size),
                      jnp.tile(params["bo"], bucket_size)], axis=0)       # (2, F)

    # TODO(synk): GaussianBlur (blurr_kernel > 1), key_padding_mask masking,
    # training-time Gumbel noise, add_bias_kv and energy_fn 'cos'/'l2' are not
    # exercised by the default/eval config and are not implemented here.
    # TODO(synk): for production-scale Sb*bucket*E, set
    # pltpu.CompilerParams(vmem_limit_bytes=...) and split the bucket*E feature
    # axis with an extra grid axis (v7x has only 64 MiB physical VMEM).

    kernel = functools.partial(_fused_sinkhorn_kernel,
                               scale_over_tau=scaling / tau, tau=tau,
                               iters=iters, matmul_dtype=matmul_dtype)
    const2 = lambda b: (0, 0)

    out_b, pw_la = pl.pallas_call(
        kernel,
        out_shape=(jax.ShapeDtypeStruct((B, Tb, F), dt),           # attn, lane-dense
                   jax.ShapeDtypeStruct((B, 2 * Tb, Sb), jnp.float32)),  # [p ; log_alpha]
        grid=(B // block_b,),
        in_specs=[pl.BlockSpec((block_b, Tb, E), lambda b: (b, 0, 0)),
                  pl.BlockSpec((block_b, Sb, E), lambda b: (b, 0, 0)),
                  pl.BlockSpec((block_b, Sb, F), lambda b: (b, 0, 0)),
                  pl.BlockSpec((2 * E, E), const2),
                  pl.BlockSpec((2, E), const2),
                  pl.BlockSpec((2 * F, F), const2),
                  pl.BlockSpec((2, F), const2)],
        out_specs=(pl.BlockSpec((block_b, Tb, F), lambda b: (b, 0, 0)),
                   pl.BlockSpec((block_b, 2 * Tb, Sb), lambda b: (b, 0, 0))),
        compiler_params=pltpu.CompilerParams(
            dimension_semantics=("parallel",)),
    )(q_agg, k_agg, v_rsh, w_qk, b_qk, w_vo, b_vo)

    # (B, Tb, bucket*E) row-major == (B, T, E); back to time-major.
    out = jnp.transpose(out_b.reshape(B, T, E), (1, 0, 2))
    attn_weights = pw_la[:, :Tb, :]
    log_alpha = pw_la[:, Tb:, :]
    return out, attn_weights, log_alpha


# ---------------------------------------------------------------------------
# Deterministic parameter init (matches module's init scheme in spirit)
# ---------------------------------------------------------------------------

def xavier_uniform(key, shape, gain=1.0):
    fan_out, fan_in = shape
    a = gain * math.sqrt(6.0 / (fan_in + fan_out))
    return jax.random.uniform(key, shape, jnp.float32, -a, a)


def make_params(key, E):
    ks = jax.random.split(key, 8)
    g = 1.0 / math.sqrt(2.0)
    return {
        "wq": xavier_uniform(ks[0], (E, E), g),
        "bq": jax.random.uniform(ks[1], (E,), jnp.float32, -0.1, 0.1),
        "wk": xavier_uniform(ks[2], (E, E), g),
        "bk": jax.random.uniform(ks[3], (E,), jnp.float32, -0.1, 0.1),
        "wv": xavier_uniform(ks[4], (E, E), g),
        "bv": jax.random.uniform(ks[5], (E,), jnp.float32, -0.1, 0.1),
        "wo": xavier_uniform(ks[6], (E, E), 1.0),
        "bo": jnp.zeros((E,), jnp.float32),       # nn.init.constant_(out_proj.bias, 0)
    }


# ---------------------------------------------------------------------------
# Pure-JAX reference (mirrors the PyTorch forward) for a sanity check
# ---------------------------------------------------------------------------

def reference_forward(query, key, value, params, *, bucket_size, tau, iters):
    T, B, E = query.shape
    S = key.shape[0]
    scaling = E ** (-0.5)
    lin = lambda x, w, b: jnp.einsum("...i,oi->...o", x, w,
                                     precision=jax.lax.Precision.HIGHEST) + b
    q = lin(query, params["wq"], params["bq"]).transpose(1, 0, 2)
    k = lin(key, params["wk"], params["bk"]).transpose(1, 0, 2)
    v = lin(value, params["wv"], params["bv"]).transpose(1, 0, 2)
    Tb, Sb = T // bucket_size, S // bucket_size
    qa = q.reshape(B, Tb, bucket_size, E).mean(2)
    ka = k.reshape(B, Sb, bucket_size, E).mean(2)
    va = v.reshape(B, Sb, bucket_size * E)
    la = jnp.einsum("bte,bse->bts", qa, ka,
                    precision=jax.lax.Precision.HIGHEST) * scaling
    x = la / tau
    for _ in range(iters):
        x = x - jax.scipy.special.logsumexp(x, axis=-1, keepdims=True)
        x = x - jax.scipy.special.logsumexp(x, axis=-2, keepdims=True)
    p = jnp.exp(x)
    attn = jnp.einsum("bts,bsf->btf", p, va, precision=jax.lax.Precision.HIGHEST)
    attn = attn.reshape(B, Tb * bucket_size, E).transpose(1, 0, 2)
    out = lin(attn, params["wo"], params["bo"])
    return out, p, la


# ---------------------------------------------------------------------------

if __name__ == "__main__":
    E = 32           # embed_dim
    bucket_size = 4
    T, S, B = 32, 16, 2
    tau, iters = 0.75, 8

    root = jax.random.PRNGKey(0)
    k_q, k_k, k_v, k_p = jax.random.split(root, 4)
    query = jax.random.normal(k_q, (T, B, E), jnp.float32)
    key = jax.random.normal(k_k, (S, B, E), jnp.float32)
    value = jax.random.normal(k_v, (S, B, E), jnp.float32)
    params = make_params(k_p, E)

    # matmul_dtype=jnp.bfloat16 is the recommended setting on v6e/v7x (MXU fast
    # path; sinkhorn stays f32).  f32 here to keep the tight correctness check.
    fwd = jax.jit(functools.partial(sinkhorn_attention_forward,
                                    bucket_size=bucket_size, tau=tau, iters=iters,
                                    matmul_dtype=jnp.float32))
    out, attn_w, log_alpha = fwd(query, key, value, params)
    jax.block_until_ready((out, attn_w, log_alpha))

    # sanity check against a pure-JAX reference of the PyTorch forward
    r_out, r_w, r_la = reference_forward(
        query, key, value, params, bucket_size=bucket_size, tau=tau, iters=iters)
    np.testing.assert_allclose(np.asarray(out), np.asarray(r_out), rtol=1e-2, atol=1e-2)
    np.testing.assert_allclose(np.asarray(attn_w), np.asarray(r_w), rtol=1e-2, atol=1e-2)
    np.testing.assert_allclose(np.asarray(log_alpha), np.asarray(r_la), rtol=1e-2, atol=1e-2)

    assert out.shape == (T, B, E)
    assert attn_w.shape == (B, T // bucket_size, S // bucket_size)
    assert log_alpha.shape == (B, T // bucket_size, S // bucket_size)
    print("KERNEL_OK")
</pallas_src>

<mosaic_0001>
module attributes {stable_mosaic.version = 11 : i64} {
  func.func @_fused_sinkhorn_kernel(%arg0: i32, %arg1: memref<1x8x32xf32, #tpu.memory_space<vmem>>, %arg2: memref<1x4x32xf32, #tpu.memory_space<vmem>>, %arg3: memref<1x4x128xf32, #tpu.memory_space<vmem>>, %arg4: memref<64x32xf32, #tpu.memory_space<vmem>>, %arg5: memref<2x32xf32, #tpu.memory_space<vmem>>, %arg6: memref<256x128xf32, #tpu.memory_space<vmem>>, %arg7: memref<2x128xf32, #tpu.memory_space<vmem>>, %arg8: memref<1x8x128xf32, #tpu.memory_space<vmem>>, %arg9: memref<1x16x4xf32, #tpu.memory_space<vmem>>) attributes {dimension_semantics = [#tpu.dimension_semantics<parallel>], iteration_bounds = array<i64: 2>, scalar_prefetch = 0 : i64, scratch_operands = 0 : i64, tpu.core_type = #tpu.core_type<tc>, window_params = [{transform_indices = @transform_0, window_bounds = array<i64: 1, 8, 32>}, {transform_indices = @transform_1, window_bounds = array<i64: 1, 4, 32>}, {transform_indices = @transform_2, window_bounds = array<i64: 1, 4, 128>}, {pipeline_mode = #tpu.pipeline_mode<synchronous>, transform_indices = @transform_3, window_bounds = array<i64: 64, 32>}, {pipeline_mode = #tpu.pipeline_mode<synchronous>, transform_indices = @transform_4, window_bounds = array<i64: 2, 32>}, {pipeline_mode = #tpu.pipeline_mode<synchronous>, transform_indices = @transform_5, window_bounds = array<i64: 256, 128>}, {pipeline_mode = #tpu.pipeline_mode<synchronous>, transform_indices = @transform_6, window_bounds = array<i64: 2, 128>}, {transform_indices = @transform_7, window_bounds = array<i64: 1, 8, 128>}, {transform_indices = @transform_8, window_bounds = array<i64: 1, 16, 4>}]} {
    %c0 = arith.constant 0 : index
    %c0_0 = arith.constant 0 : index
    %0 = vector.load %arg4[%c0, %c0_0] : memref<64x32xf32, #tpu.memory_space<vmem>>, vector<64x32xf32>
    %c0_1 = arith.constant 0 : index
    %c0_2 = arith.constant 0 : index
    %1 = vector.load %arg5[%c0_1, %c0_2] : memref<2x32xf32, #tpu.memory_space<vmem>>, vector<2x32xf32>
    %c0_3 = arith.constant 0 : index
    %c0_4 = arith.constant 0 : index
    %2 = vector.load %arg6[%c0_3, %c0_4] : memref<256x128xf32, #tpu.memory_space<vmem>>, vector<256x128xf32>
    %c0_5 = arith.constant 0 : index
    %c0_6 = arith.constant 0 : index
    %3 = vector.load %arg7[%c0_5, %c0_6] : memref<2x128xf32, #tpu.memory_space<vmem>>, vector<2x128xf32>
    %4 = vector.extract_strided_slice %0 {offsets = [0, 0], sizes = [32, 32], strides = [1, 1]} : vector<64x32xf32> to vector<32x32xf32>
    %5 = vector.extract_strided_slice %0 {offsets = [32, 0], sizes = [32, 32], strides = [1, 1]} : vector<64x32xf32> to vector<32x32xf32>
    %6 = vector.extract_strided_slice %1 {offsets = [0, 0], sizes = [1, 32], strides = [1, 1]} : vector<2x32xf32> to vector<1x32xf32>
    %7 = vector.extract_strided_slice %1 {offsets = [1, 0], sizes = [1, 32], strides = [1, 1]} : vector<2x32xf32> to vector<1x32xf32>
    %8 = vector.extract_strided_slice %2 {offsets = [0, 0], sizes = [128, 128], strides = [1, 1]} : vector<256x128xf32> to vector<128x128xf32>
    %9 = vector.extract_strided_slice %2 {offsets = [128, 0], sizes = [128, 128], strides = [1, 1]} : vector<256x128xf32> to vector<128x128xf32>
    %10 = vector.extract_strided_slice %3 {offsets = [0, 0], sizes = [1, 128], strides = [1, 1]} : vector<2x128xf32> to vector<1x128xf32>
    %11 = vector.extract_strided_slice %3 {offsets = [1, 0], sizes = [1, 128], strides = [1, 1]} : vector<2x128xf32> to vector<1x128xf32>
    %c0_7 = arith.constant 0 : index
    %c0_8 = arith.constant 0 : index
    %c0_9 = arith.constant 0 : index
    %12 = vector.load %arg1[%c0_7, %c0_8, %c0_9] : memref<1x8x32xf32, #tpu.memory_space<vmem>>, vector<1x8x32xf32>
    %13 = vector.shape_cast %12 : vector<1x8x32xf32> to vector<8x32xf32>
    %c0_10 = arith.constant 0 : index
    %c0_11 = arith.constant 0 : index
    %c0_12 = arith.constant 0 : index
    %14 = vector.load %arg2[%c0_10, %c0_11, %c0_12] : memref<1x4x32xf32, #tpu.memory_space<vmem>>, vector<1x4x32xf32>
    %15 = vector.shape_cast %14 : vector<1x4x32xf32> to vector<4x32xf32>
    %c0_13 = arith.constant 0 : index
    %c0_14 = arith.constant 0 : index
    %c0_15 = arith.constant 0 : index
    %16 = vector.load %arg3[%c0_13, %c0_14, %c0_15] : memref<1x4x128xf32, #tpu.memory_space<vmem>>, vector<1x4x128xf32>
    %17 = vector.shape_cast %16 : vector<1x4x128xf32> to vector<4x128xf32>
    %cst = arith.constant dense<0.000000e+00> : vector<8x32xf32>
    %18 = tpu.matmul %13, %4, %cst {dimension_numbers = #tpu.dot_dimension_numbers<[1], [0], [0], [1], [0, 0, 1, 1], [], []>} : vector<8x32xf32>, vector<32x32xf32>, vector<8x32xf32> -> vector<8x32xf32>
    %19 = vector.broadcast %6 : vector<1x32xf32> to vector<8x32xf32>
    %20 = arith.addf %18, %19 : vector<8x32xf32>
    %21 = vector.shape_cast %20 : vector<8x32xf32> to vector<1x8x32xf32>
    %cst_16 = arith.constant dense<0.000000e+00> : vector<4x32xf32>
    %22 = tpu.matmul %15, %5, %cst_16 {dimension_numbers = #tpu.dot_dimension_numbers<[1], [0], [0], [1], [0, 0, 1, 1], [], []>} : vector<4x32xf32>, vector<32x32xf32>, vector<4x32xf32> -> vector<4x32xf32>
    %23 = vector.broadcast %7 : vector<1x32xf32> to vector<4x32xf32>
    %24 = arith.addf %22, %23 : vector<4x32xf32>
    %25 = vector.shape_cast %24 : vector<4x32xf32> to vector<1x4x32xf32>
    %cst_17 = arith.constant dense<0.000000e+00> : vector<4x128xf32>
    %26 = tpu.matmul %17, %8, %cst_17 {dimension_numbers = #tpu.dot_dimension_numbers<[1], [0], [0], [1], [0, 0, 1, 1], [], []>} : vector<4x128xf32>, vector<128x128xf32>, vector<4x128xf32> -> vector<4x128xf32>
    %27 = vector.broadcast %10 : vector<1x128xf32> to vector<4x128xf32>
    %28 = arith.addf %26, %27 : vector<4x128xf32>
    %29 = vector.shape_cast %28 : vector<4x128xf32> to vector<1x4x128xf32>
    "tpu.trace_start"() <{level = 10 : i32, message = "bte,bse->bts"}> : () -> ()
    %cst_18 = arith.constant dense<0.000000e+00> : vector<1x8x4xf32>
    %30 = tpu.matmul %21, %25, %cst_18 {dimension_numbers = #tpu.dot_dimension_numbers<[2], [2], [1], [1], [0, 0, 0, 1, 1, 1], [0], [0]>} : vector<1x8x32xf32>, vector<1x4x32xf32>, vector<1x8x4xf32> -> vector<1x8x4xf32>
    "tpu.trace_stop"() : () -> ()
    %cst_19 = arith.constant 0.235702261 : f32
    %31 = vector.broadcast %cst_19 : f32 to vector<1x8x4xf32>
    %32 = arith.mulf %30, %31 : vector<1x8x4xf32>
    %cst_20 = arith.constant 7.500000e-01 : f32
    %33 = vector.broadcast %cst_20 : f32 to vector<1x8x4xf32>
    %34 = arith.mulf %32, %33 : vector<1x8x4xf32>
    %c0_21 = arith.constant 0 : index
    %c8 = arith.constant 8 : index
    %c0_22 = arith.constant 0 : index
    %35 = vector.load %arg9[%c0_21, %c8, %c0_22] : memref<1x16x4xf32, #tpu.memory_space<vmem>>, vector<1x8x4xf32>
    tpu.vector_store %arg9[%c0_21, %c8, %c0_22], %34 {strides = array<i32>} : memref<1x16x4xf32, #tpu.memory_space<vmem>>, vector<1x8x4xf32>,
    %cst_23 = arith.constant dense<0xFF800000> : vector<1x8xf32>
    %36 = vector.multi_reduction <maximumf>, %32, %cst_23 [2] : vector<1x8x4xf32> to vector<1x8xf32>
    %37 = vector.shape_cast %36 : vector<1x8xf32> to vector<1x8x1xf32>
    %38 = vector.broadcast %37 : vector<1x8x1xf32> to vector<1x8x4xf32>
    %39 = arith.subf %32, %38 : vector<1x8x4xf32>
    %40 = math.exp %39 : vector<1x8x4xf32>
    %cst_24 = arith.constant dense<0.000000e+00> : vector<1x8xf32>
    %41 = vector.multi_reduction <add>, %40, %cst_24 [2] : vector<1x8x4xf32> to vector<1x8xf32>
    %42 = vector.shape_cast %41 : vector<1x8xf32> to vector<1x8x1xf32>
    %43 = math.log %42 : vector<1x8x1xf32>
    %44 = arith.addf %43, %37 : vector<1x8x1xf32>
    %45 = vector.broadcast %44 : vector<1x8x1xf32> to vector<1x8x4xf32>
    %46 = arith.subf %32, %45 : vector<1x8x4xf32>
    %cst_25 = arith.constant dense<0xFF800000> : vector<1x4xf32>
    %47 = vector.multi_reduction <maximumf>, %46, %cst_25 [1] : vector<1x8x4xf32> to vector<1x4xf32>
    %48 = vector.shape_cast %47 : vector<1x4xf32> to vector<1x1x4xf32>
    %49 = vector.broadcast %48 : vector<1x1x4xf32> to vector<1x8x4xf32>
    %50 = arith.subf %46, %49 : vector<1x8x4xf32>
    %51 = math.exp %50 : vector<1x8x4xf32>
    %cst_26 = arith.constant dense<0.000000e+00> : vector<1x4xf32>
    %52 = vector.multi_reduction <add>, %51, %cst_26 [1] : vector<1x8x4xf32> to vector<1x4xf32>
    %53 = vector.shape_cast %52 : vector<1x4xf32> to vector<1x1x4xf32>
    %54 = math.log %53 : vector<1x1x4xf32>
    %55 = arith.addf %54, %48 : vector<1x1x4xf32>
    %56 = vector.broadcast %55 : vector<1x1x4xf32> to vector<1x8x4xf32>
    %57 = arith.subf %46, %56 : vector<1x8x4xf32>
    %cst_27 = arith.constant dense<0xFF800000> : vector<1x8xf32>
    %58 = vector.multi_reduction <maximumf>, %57, %cst_27 [2] : vector<1x8x4xf32> to vector<1x8xf32>
    %59 = vector.shape_cast %58 : vector<1x8xf32> to vector<1x8x1xf32>
    %60 = vector.broadcast %59 : vector<1x8x1xf32> to vector<1x8x4xf32>
    %61 = arith.subf %57, %60 : vector<1x8x4xf32>
    %62 = math.exp %61 : vector<1x8x4xf32>
    %cst_28 = arith.constant dense<0.000000e+00> : vector<1x8xf32>
    %63 = vector.multi_reduction <add>, %62, %cst_28 [2] : vector<1x8x4xf32> to vector<1x8xf32>
    %64 = vector.shape_cast %63 : vector<1x8xf32> to vector<1x8x1xf32>
    %65 = math.log %64 : vector<1x8x1xf32>
    %66 = arith.addf %65, %59 : vector<1x8x1xf32>
    %67 = vector.broadcast %66 : vector<1x8x1xf32> to vector<1x8x4xf32>
    %68 = arith.subf %57, %67 : vector<1x8x4xf32>
    %cst_29 = arith.constant dense<0xFF800000> : vector<1x4xf32>
    %69 = vector.multi_reduction <maximumf>, %68, %cst_29 [1] : vector<1x8x4xf32> to vector<1x4xf32>
    %70 = vector.shape_cast %69 : vector<1x4xf32> to vector<1x1x4xf32>
    %71 = vector.broadcast %70 : vector<1x1x4xf32> to vector<1x8x4xf32>
    %72 = arith.subf %68, %71 : vector<1x8x4xf32>
    %73 = math.exp %72 : vector<1x8x4xf32>
    %cst_30 = arith.constant dense<0.000000e+00> : vector<1x4xf32>
    %74 = vector.multi_reduction <add>, %73, %cst_30 [1] : vector<1x8x4xf32> to vector<1x4xf32>
    %75 = vector.shape_cast %74 : vector<1x4xf32> to vector<1x1x4xf32>
    %76 = math.log %75 : vector<1x1x4xf32>
    %77 = arith.addf %76, %70 : vector<1x1x4xf32>
    %78 = vector.broadcast %77 : vector<1x1x4xf32> to vector<1x8x4xf32>
    %79 = arith.subf %68, %78 : vector<1x8x4xf32>
    %cst_31 = arith.constant dense<0xFF800000> : vector<1x8xf32>
    %80 = vector.multi_reduction <maximumf>, %79, %cst_31 [2] : vector<1x8x4xf32> to vector<1x8xf32>
    %81 = vector.shape_cast %80 : vector<1x8xf32> to vector<1x8x1xf32>
    %82 = vector.broadcast %81 : vector<1x8x1xf32> to vector<1x8x4xf32>
    %83 = arith.subf %79, %82 : vector<1x8x4xf32>
    %84 = math.exp %83 : vector<1x8x4xf32>
    %cst_32 = arith.constant dense<0.000000e+00> : vector<1x8xf32>
    %85 = vector.multi_reduction <add>, %84, %cst_32 [2] : vector<1x8x4xf32> to vector<1x8xf32>
    %86 = vector.shape_cast %85 : vector<1x8xf32> to vector<1x8x1xf32>
    %87 = math.log %86 : vector<1x8x1xf32>
    %88 = arith.addf %87, %81 : vector<1x8x1xf32>
    %89 = vector.broadcast %88 : vector<1x8x1xf32> to vector<1x8x4xf32>
    %90 = arith.subf %79, %89 : vector<1x8x4xf32>
    %cst_33 = arith.constant dense<0xFF800000> : vector<1x4xf32>
    %91 = vector.multi_reduction <maximumf>, %90, %cst_33 [1] : vector<1x8x4xf32> to vector<1x4xf32>
    %92 = vector.shape_cast %91 : vector<1x4xf32> to vector<1x1x4xf32>
    %93 = vector.broadcast %92 : vector<1x1x4xf32> to vector<1x8x4xf32>
    %94 = arith.subf %90, %93 : vector<1x8x4xf32>
    %95 = math.exp %94 : vector<1x8x4xf32>
    %cst_34 = arith.constant dense<0.000000e+00> : vector<1x4xf32>
    %96 = vector.multi_reduction <add>, %95, %cst_34 [1] : vector<1x8x4xf32> to vector<1x4xf32>
    %97 = vector.shape_cast %96 : vector<1x4xf32> to vector<1x1x4xf32>
    %98 = math.log %97 : vector<1x1x4xf32>
    %99 = arith.addf %98, %92 : vector<1x1x4xf32>
    %100 = vector.broadcast %99 : vector<1x1x4xf32> to vector<1x8x4xf32>
    %101 = arith.subf %90, %100 : vector<1x8x4xf32>
    %cst_35 = arith.constant dense<0xFF800000> : vector<1x8xf32>
    %102 = vector.multi_reduction <maximumf>, %101, %cst_35 [2] : vector<1x8x4xf32> to vector<1x8xf32>
    %103 = vector.shape_cast %102 : vector<1x8xf32> to vector<1x8x1xf32>
    %104 = vector.broadcast %103 : vector<1x8x1xf32> to vector<1x8x4xf32>
    %105 = arith.subf %101, %104 : vector<1x8x4xf32>
    %106 = math.exp %105 : vector<1x8x4xf32>
    %cst_36 = arith.constant dense<0.000000e+00> : vector<1x8xf32>
    %107 = vector.multi_reduction <add>, %106, %cst_36 [2] : vector<1x8x4xf32> to vector<1x8xf32>
    %108 = vector.shape_cast %107 : vector<1x8xf32> to vector<1x8x1xf32>
    %109 = math.log %108 : vector<1x8x1xf32>
    %110 = arith.addf %109, %103 : vector<1x8x1xf32>
    %111 = vector.broadcast %110 : vector<1x8x1xf32> to vector<1x8x4xf32>
    %112 = arith.subf %101, %111 : vector<1x8x4xf32>
    %cst_37 = arith.constant dense<0xFF800000> : vector<1x4xf32>
    %113 = vector.multi_reduction <maximumf>, %112, %cst_37 [1] : vector<1x8x4xf32> to vector<1x4xf32>
    %114 = vector.shape_cast %113 : vector<1x4xf32> to vector<1x1x4xf32>
    %115 = vector.broadcast %114 : vector<1x1x4xf32> to vector<1x8x4xf32>
    %116 = arith.subf %112, %115 : vector<1x8x4xf32>
    %117 = math.exp %116 : vector<1x8x4xf32>
    %cst_38 = arith.constant dense<0.000000e+00> : vector<1x4xf32>
    %118 = vector.multi_reduction <add>, %117, %cst_38 [1] : vector<1x8x4xf32> to vector<1x4xf32>
    %119 = vector.shape_cast %118 : vector<1x4xf32> to vector<1x1x4xf32>
    %120 = math.log %119 : vector<1x1x4xf32>
    %121 = arith.addf %120, %114 : vector<1x1x4xf32>
    %122 = vector.broadcast %121 : vector<1x1x4xf32> to vector<1x8x4xf32>
    %123 = arith.subf %112, %122 : vector<1x8x4xf32>
    %cst_39 = arith.constant dense<0xFF800000> : vector<1x8xf32>
    %124 = vector.multi_reduction <maximumf>, %123, %cst_39 [2] : vector<1x8x4xf32> to vector<1x8xf32>
    %125 = vector.shape_cast %124 : vector<1x8xf32> to vector<1x8x1xf32>
    %126 = vector.broadcast %125 : vector<1x8x1xf32> to vector<1x8x4xf32>
    %127 = arith.subf %123, %126 : vector<1x8x4xf32>
    %128 = math.exp %127 : vector<1x8x4xf32>
    %cst_40 = arith.constant dense<0.000000e+00> : vector<1x8xf32>
    %129 = vector.multi_reduction <add>, %128, %cst_40 [2] : vector<1x8x4xf32> to vector<1x8xf32>
    %130 = vector.shape_cast %129 : vector<1x8xf32> to vector<1x8x1xf32>
    %131 = math.log %130 : vector<1x8x1xf32>
    %132 = arith.addf %131, %125 : vector<1x8x1xf32>
    %133 = vector.broadcast %132 : vector<1x8x1xf32> to vector<1x8x4xf32>
    %134 = arith.subf %123, %133 : vector<1x8x4xf32>
    %cst_41 = arith.constant dense<0xFF800000> : vector<1x4xf32>
    %135 = vector.multi_reduction <maximumf>, %134, %cst_41 [1] : vector<1x8x4xf32> to vector<1x4xf32>
    %136 = vector.shape_cast %135 : vector<1x4xf32> to vector<1x1x4xf32>
    %137 = vector.broadcast %136 : vector<1x1x4xf32> to vector<1x8x4xf32>
    %138 = arith.subf %134, %137 : vector<1x8x4xf32>
    %139 = math.exp %138 : vector<1x8x4xf32>
    %cst_42 = arith.constant dense<0.000000e+00> : vector<1x4xf32>
    %140 = vector.multi_reduction <add>, %139, %cst_42 [1] : vector<1x8x4xf32> to vector<1x4xf32>
    %141 = vector.shape_cast %140 : vector<1x4xf32> to vector<1x1x4xf32>
    %142 = math.log %141 : vector<1x1x4xf32>
    %143 = arith.addf %142, %136 : vector<1x1x4xf32>
    %144 = vector.broadcast %143 : vector<1x1x4xf32> to vector<1x8x4xf32>
    %145 = arith.subf %134, %144 : vector<1x8x4xf32>
    %cst_43 = arith.constant dense<0xFF800000> : vector<1x8xf32>
    %146 = vector.multi_reduction <maximumf>, %145, %cst_43 [2] : vector<1x8x4xf32> to vector<1x8xf32>
    %147 = vector.shape_cast %146 : vector<1x8xf32> to vector<1x8x1xf32>
    %148 = vector.broadcast %147 : vector<1x8x1xf32> to vector<1x8x4xf32>
    %149 = arith.subf %145, %148 : vector<1x8x4xf32>
    %150 = math.exp %149 : vector<1x8x4xf32>
    %cst_44 = arith.constant dense<0.000000e+00> : vector<1x8xf32>
    %151 = vector.multi_reduction <add>, %150, %cst_44 [2] : vector<1x8x4xf32> to vector<1x8xf32>
    %152 = vector.shape_cast %151 : vector<1x8xf32> to vector<1x8x1xf32>
    %153 = math.log %152 : vector<1x8x1xf32>
    %154 = arith.addf %153, %147 : vector<1x8x1xf32>
    %155 = vector.broadcast %154 : vector<1x8x1xf32> to vector<1x8x4xf32>
    %156 = arith.subf %145, %155 : vector<1x8x4xf32>
    %cst_45 = arith.constant dense<0xFF800000> : vector<1x4xf32>
    %157 = vector.multi_reduction <maximumf>, %156, %cst_45 [1] : vector<1x8x4xf32> to vector<1x4xf32>
    %158 = vector.shape_cast %157 : vector<1x4xf32> to vector<1x1x4xf32>
    %159 = vector.broadcast %158 : vector<1x1x4xf32> to vector<1x8x4xf32>
    %160 = arith.subf %156, %159 : vector<1x8x4xf32>
    %161 = math.exp %160 : vector<1x8x4xf32>
    %cst_46 = arith.constant dense<0.000000e+00> : vector<1x4xf32>
    %162 = vector.multi_reduction <add>, %161, %cst_46 [1] : vector<1x8x4xf32> to vector<1x4xf32>
    %163 = vector.shape_cast %162 : vector<1x4xf32> to vector<1x1x4xf32>
    %164 = math.log %163 : vector<1x1x4xf32>
    %165 = arith.addf %164, %158 : vector<1x1x4xf32>
    %166 = vector.broadcast %165 : vector<1x1x4xf32> to vector<1x8x4xf32>
    %167 = arith.subf %156, %166 : vector<1x8x4xf32>
    %cst_47 = arith.constant dense<0xFF800000> : vector<1x8xf32>
    %168 = vector.multi_reduction <maximumf>, %167, %cst_47 [2] : vector<1x8x4xf32> to vector<1x8xf32>
    %169 = vector.shape_cast %168 : vector<1x8xf32> to vector<1x8x1xf32>
    %170 = vector.broadcast %169 : vector<1x8x1xf32> to vector<1x8x4xf32>
    %171 = arith.subf %167, %170 : vector<1x8x4xf32>
    %172 = math.exp %171 : vector<1x8x4xf32>
    %cst_48 = arith.constant dense<0.000000e+00> : vector<1x8xf32>
    %173 = vector.multi_reduction <add>, %172, %cst_48 [2] : vector<1x8x4xf32> to vector<1x8xf32>
    %174 = vector.shape_cast %173 : vector<1x8xf32> to vector<1x8x1xf32>
    %175 = math.log %174 : vector<1x8x1xf32>
    %176 = arith.addf %175, %169 : vector<1x8x1xf32>
    %177 = vector.broadcast %176 : vector<1x8x1xf32> to vector<1x8x4xf32>
    %178 = arith.subf %167, %177 : vector<1x8x4xf32>
    %cst_49 = arith.constant dense<0xFF800000> : vector<1x4xf32>
    %179 = vector.multi_reduction <maximumf>, %178, %cst_49 [1] : vector<1x8x4xf32> to vector<1x4xf32>
    %180 = vector.shape_cast %179 : vector<1x4xf32> to vector<1x1x4xf32>
    %181 = vector.broadcast %180 : vector<1x1x4xf32> to vector<1x8x4xf32>
    %182 = arith.subf %178, %181 : vector<1x8x4xf32>
    %183 = math.exp %182 : vector<1x8x4xf32>
    %cst_50 = arith.constant dense<0.000000e+00> : vector<1x4xf32>
    %184 = vector.multi_reduction <add>, %183, %cst_50 [1] : vector<1x8x4xf32> to vector<1x4xf32>
    %185 = vector.shape_cast %184 : vector<1x4xf32> to vector<1x1x4xf32>
    %186 = math.log %185 : vector<1x1x4xf32>
    %187 = arith.addf %186, %180 : vector<1x1x4xf32>
    %188 = vector.broadcast %187 : vector<1x1x4xf32> to vector<1x8x4xf32>
    %189 = arith.subf %178, %188 : vector<1x8x4xf32>
    %cst_51 = arith.constant dense<0xFF800000> : vector<1x8xf32>
    %190 = vector.multi_reduction <maximumf>, %189, %cst_51 [2] : vector<1x8x4xf32> to vector<1x8xf32>
    %191 = vector.shape_cast %190 : vector<1x8xf32> to vector<1x8x1xf32>
    %192 = vector.broadcast %191 : vector<1x8x1xf32> to vector<1x8x4xf32>
    %193 = arith.subf %189, %192 : vector<1x8x4xf32>
    %194 = math.exp %193 : vector<1x8x4xf32>
    %cst_52 = arith.constant dense<0.000000e+00> : vector<1x8xf32>
    %195 = vector.multi_reduction <add>, %194, %cst_52 [2] : vector<1x8x4xf32> to vector<1x8xf32>
    %196 = vector.shape_cast %195 : vector<1x8xf32> to vector<1x8x1xf32>
    %197 = math.log %196 : vector<1x8x1xf32>
    %198 = arith.addf %197, %191 : vector<1x8x1xf32>
    %199 = vector.broadcast %198 : vector<1x8x1xf32> to vector<1x8x4xf32>
    %200 = arith.subf %189, %199 : vector<1x8x4xf32>
    %cst_53 = arith.constant dense<0xFF800000> : vector<1x4xf32>
    %201 = vector.multi_reduction <maximumf>, %200, %cst_53 [1] : vector<1x8x4xf32> to vector<1x4xf32>
    %202 = vector.shape_cast %201 : vector<1x4xf32> to vector<1x1x4xf32>
    %203 = vector.broadcast %202 : vector<1x1x4xf32> to vector<1x8x4xf32>
    %204 = arith.subf %200, %203 : vector<1x8x4xf32>
    %205 = math.exp %204 : vector<1x8x4xf32>
    %cst_54 = arith.constant dense<0.000000e+00> : vector<1x4xf32>
    %206 = vector.multi_reduction <add>, %205, %cst_54 [1] : vector<1x8x4xf32> to vector<1x4xf32>
    %207 = vector.shape_cast %206 : vector<1x4xf32> to vector<1x1x4xf32>
    %208 = math.log %207 : vector<1x1x4xf32>
    %209 = arith.addf %208, %202 : vector<1x1x4xf32>
    %210 = vector.broadcast %209 : vector<1x1x4xf32> to vector<1x8x4xf32>
    %211 = arith.subf %200, %210 : vector<1x8x4xf32>
    %212 = math.exp %211 : vector<1x8x4xf32>
    %c0_55 = arith.constant 0 : index
    %c0_56 = arith.constant 0 : index
    %c0_57 = arith.constant 0 : index
    %213 = vector.load %arg9[%c0_55, %c0_56, %c0_57] : memref<1x16x4xf32, #tpu.memory_space<vmem>>, vector<1x8x4xf32>
    tpu.vector_store %arg9[%c0_55, %c0_56, %c0_57], %212 {strides = array<i32>} : memref<1x16x4xf32, #tpu.memory_space<vmem>>, vector<1x8x4xf32>,
    "tpu.trace_start"() <{level = 10 : i32, message = "bts,bsf->btf"}> : () -> ()
    %cst_58 = arith.constant dense<0.000000e+00> : vector<1x8x128xf32>
    %214 = tpu.matmul %212, %29, %cst_58 {dimension_numbers = #tpu.dot_dimension_numbers<[2], [1], [1], [2], [0, 0, 0, 1, 1, 2], [0], [0]>} : vector<1x8x4xf32>, vector<1x4x128xf32>, vector<1x8x128xf32> -> vector<1x8x128xf32>
    "tpu.trace_stop"() : () -> ()
    %215 = vector.shape_cast %214 : vector<1x8x128xf32> to vector<8x128xf32>
    %cst_59 = arith.constant dense<0.000000e+00> : vector<8x128xf32>
    %216 = tpu.matmul %215, %9, %cst_59 {dimension_numbers = #tpu.dot_dimension_numbers<[1], [0], [0], [1], [0, 0, 1, 1], [], []>} : vector<8x128xf32>, vector<128x128xf32>, vector<8x128xf32> -> vector<8x128xf32>
    %217 = vector.broadcast %11 : vector<1x128xf32> to vector<8x128xf32>
    %218 = arith.addf %216, %217 : vector<8x128xf32>
    %219 = vector.shape_cast %218 : vector<8x128xf32> to vector<1x8x128xf32>
    %c0_60 = arith.constant 0 : index
    %c0_61 = arith.constant 0 : index
    %c0_62 = arith.constant 0 : index
    %220 = vector.load %arg8[%c0_60, %c0_61, %c0_62] : memref<1x8x128xf32, #tpu.memory_space<vmem>>, vector<1x8x128xf32>
    tpu.vector_store %arg8[%c0_60, %c0_61, %c0_62], %219 {strides = array<i32>} : memref<1x8x128xf32, #tpu.memory_space<vmem>>, vector<1x8x128xf32>,
    return
  }
  func.func @transform_0(%arg0: i32) -> (i32, i32, i32) {
    %c0_i32 = arith.constant 0 : i32
    %c0_i32_0 = arith.constant 0 : i32
    %c0_i32_1 = arith.constant 0 : i32
    return %arg0, %c0_i32, %c0_i32_0 : i32, i32, i32
  }
  func.func @transform_1(%arg0: i32) -> (i32, i32, i32) {
    %c0_i32 = arith.constant 0 : i32
    %c0_i32_0 = arith.constant 0 : i32
    %c0_i32_1 = arith.constant 0 : i32
    return %arg0, %c0_i32, %c0_i32_0 : i32, i32, i32
  }
  func.func @transform_2(%arg0: i32) -> (i32, i32, i32) {
    %c0_i32 = arith.constant 0 : i32
    %c0_i32_0 = arith.constant 0 : i32
    %c0_i32_1 = arith.constant 0 : i32
    return %arg0, %c0_i32, %c0_i32_0 : i32, i32, i32
  }
  func.func @transform_3(%arg0: i32) -> (i32, i32) {
    %c0_i32 = arith.constant 0 : i32
    %c0_i32_0 = arith.constant 0 : i32
    %c0_i32_1 = arith.constant 0 : i32
    return %c0_i32, %c0_i32_0 : i32, i32
  }
  func.func @transform_4(%arg0: i32) -> (i32, i32) {
    %c0_i32 = arith.constant 0 : i32
    %c0_i32_0 = arith.constant 0 : i32
    %c0_i32_1 = arith.constant 0 : i32
    return %c0_i32, %c0_i32_0 : i32, i32
  }
  func.func @transform_5(%arg0: i32) -> (i32, i32) {
    %c0_i32 = arith.constant 0 : i32
    %c0_i32_0 = arith.constant 0 : i32
    %c0_i32_1 = arith.constant 0 : i32
    return %c0_i32, %c0_i32_0 : i32, i32
  }
  func.func @transform_6(%arg0: i32) -> (i32, i32) {
    %c0_i32 = arith.constant 0 : i32
    %c0_i32_0 = arith.constant 0 : i32
    %c0_i32_1 = arith.constant 0 : i32
    return %c0_i32, %c0_i32_0 : i32, i32
  }
  func.func @transform_7(%arg0: i32) -> (i32, i32, i32) {
    %c0_i32 = arith.constant 0 : i32
    %c0_i32_0 = arith.constant 0 : i32
    %c0_i32_1 = arith.constant 0 : i32
    return %arg0, %c0_i32, %c0_i32_0 : i32, i32, i32
  }
  func.func @transform_8(%arg0: i32) -> (i32, i32, i32) {
    %c0_i32 = arith.constant 0 : i32
    %c0_i32_0 = arith.constant 0 : i32
    %c0_i32_1 = arith.constant 0 : i32
    return %arg0, %c0_i32, %c0_i32_0 : i32, i32, i32
  }
}

</mosaic_0001>

<bundles_post_ra>
// kernel: tile.13
= control target key start
LH: loop header
LB: loop body
LE: loop exit
PB: predicated region body
PF: predicated region fallthrough
CT: control target
= control target key end

     0   :  { %s22_s0 = inlined_call_operand.vmem [shape: f32[32], index: 0, kind: input, shape index: {}]   ;;  %s23_s1 = inlined_call_operand.vmem [shape: f32[4,32], index: 1, kind: output, shape index: {}]  }
   0x1   :  { %v4_v0 = vld [vmem:[%s22_s0] ss:$0 sm:$0xff] }
   0x2   :  { %5 = vst [vmem:[%s23_s1] sm:$0xf] %v4_v0 }

// kernel: tile.18
= control target key start
LH: loop header
LB: loop body
LE: loop exit
PB: predicated region body
PF: predicated region fallthrough
CT: control target
= control target key end

     0   :  { %vm7_vm0 = vcmask 261120   ;;  %s37_s8 = smov 32   ;;  %s38_s9 = smov 64   ;;  %vm13_vm1 = vcmask 1048320   ;;  %vm19_vm2 = vcmask 785920   ;;  %vm25_vm3 = vcmask 523520   ;;  %s55_s0 = inlined_call_operand.vmem [shape: f32[4,32], index: 0, kind: input, shape index: {}]   ;;  %s56_s1 = inlined_call_operand.vmem [shape: f32[1,128], index: 1, kind: output, shape index: {}]  }
   0x1   :  { %v4_v0 = vld [vmem:[%s55_s0] sm:$0xf]  ;;  %s36_s0 = smov 96  }
   0x2   :  { %5 = vst [vmem:[#allocation1] sm:$0xf] %v4_v0 }
   0x9   :  { %v10_v1 = vld [vmem:[#allocation1 + $0x3] sm:$0x1]   ;;  %v22_v2 = vld [vmem:[#allocation1 + $0x1] sm:$0x1]   ;;  %v6_v3 = vld [vmem:[#allocation1] sm:$0x1]  }
   0xa   :  { %11 = vrot.lane.b32.xlu0 %v10_v1, %s36_s0  ;;  %23 = vrot.lane.b32.xlu1 %v22_v2, %s37_s8  ;;  %v16_v4 = vld [vmem:[#allocation1 + $0x2] sm:$0x1]   ;;  %8 = vst.msk [vmem:[#allocation0] sm:$0x1] %vm7_vm0, %v6_v3  }
   0xe   :  { %17 = vrot.lane.b32.xlu0 %v16_v4, %s38_s9 }
  0x7c   :  { %v12_v5 = vpop.permute.xlu0 %11   ;;  %v24_v6 = vpop.permute.xlu1 %23  }
  0x7d   :  { %14 = vst.msk [vmem:[#allocation0] sm:$0x1] %vm13_vm1, %v12_v5  }
  0x80   :  { %v18_v7 = vpop.permute.xlu0 %17  }
  0x81   :  { %20 = vst.msk [vmem:[#allocation0] sm:$0x1] %vm19_vm2, %v18_v7  }
  0x82   :  { %26 = vst.msk [vmem:[#allocation0] sm:$0x1] %vm25_vm3, %v24_v6  }
  0x89   :  { %v30_v8 = vld [vmem:[#allocation0] sm:$0x1] }
  0x8a   :  { %32 = vst [vmem:[%s56_s1] sm:$0x1] %v30_v8 }

// kernel: sinkhorn_attention_forward.1
= control target key start
LH: loop header
LB: loop body
LE: loop exit
PB: predicated region body
PF: predicated region fallthrough
CT: control target
= control target key end

     0   :  { %s1602_s27 = smov 0   ;;  %s1856_s0 = inlined_call_operand.vmem [shape: f32[2,8,32], index: 0, kind: input, shape index: {}]   ;;  %s1857_s1 = inlined_call_operand.vmem [shape: f32[2,4,32], index: 1, kind: input, shape index: {}]   ;;  %s1858_s2 = inlined_call_operand.vmem [shape: f32[2,4,128], index: 2, kind: input, shape index: {}]   ;;  %s1859_s3 = inlined_call_operand.vmem [shape: f32[64,32], index: 3, kind: input, shape index: {}]   ;;  %s1860_s4 = inlined_call_operand.vmem [shape: f32[2,32], index: 4, kind: input, shape index: {}]   ;;  %s1861_s5 = inlined_call_operand.vmem [shape: f32[256,128], index: 5, kind: input, shape index: {}]   ;;  %s1862_s6 = inlined_call_operand.vmem [shape: f32[2,128], index: 6, kind: input, shape index: {}]   ;;  %s1863_s7 = inlined_call_operand.vmem [shape: f32[2,8,128], index: 7, kind: output, shape index: {0}]   ;;  %s1864_s8 = inlined_call_operand.vmem [shape: f32[2,16,4], index: 8, kind: output, shape index: {1}]  }
   0x1 LB: > { %s1239_s28 = sadd.s32 4294967295, %s1552_s27   ;;  %p1243_p0 = scmp.ge.s32.totalorder %s1552_s27, 1  ;;  %s1552_s27 = sphi %s1602_s27, %s19_s27  }
   0x2   : > { %p282_p1 = scmp.lt.s32.totalorder %s1552_s27, 3 }
   0x4   : > { %p283_p2 = pnand %p1243_p0, %p282_p1 }
   0x5   : > { %v352_v0 = vld [vmem:[%s1859_s3 + $0x20] sm:$0xff] (!%p283_p2)  ;;  %v353_v1 = vld [vmem:[%s1859_s3 + $0x28] sm:$0xff] (!%p283_p2)  ;;  %v1554_v3 = vmov (!%p283_p2), 0.0|0.0   ;;  %v354_v6 = vld [vmem:[%s1859_s3 + $0x30] sm:$0xff] (!%p283_p2)  ;;  %p327_p3 = scmp.lt.s32.totalorder (!%p283_p2), %s1239_s28, 1  ;;  %vm1555_vm0 = vmmov (!%p283_p2), 0   ;;  %v393_v41 = vlaneseq (!%p283_p2) }
   0x6   : > { %286 = sbr.rel (%p283_p2) target bundleno = 3896 (0xf38), region = 48  ;;  %v348_v2 = vld [vmem:[%s1859_s3] sm:$0xff] (!%p283_p2)  ;;  %1415 = vmatprep.subr.bf16.mxu1 (!%p283_p2), %v1554_v3  ;;  %v1416_v4 = vpack.c.bf16 (!%p283_p2), %v353_v1, %v352_v0  ;;  %1409 = vmatprep.subr.bf16.mxu0 (!%p283_p2), %v1554_v3  ;;  %v349_v5 = vld [vmem:[%s1859_s3 + $0x8] sm:$0xff] (!%p283_p2)  ;;  %v355_v7 = vld [vmem:[%s1859_s3 + $0x38] sm:$0xff] (!%p283_p2)  ;;  %v1556_v9 = vmov (!%p283_p2), 0.0   ;;  %vm397_vm1 = vcmask (!%p283_p2), 261120  }
   0x7   : > { %v1410_v8 = vpack.c.bf16 (!%p283_p2), %v349_v5, %v348_v2  ;;  %1326 = vmatprep.mubr.msk.f32.mxu1 (!%p283_p2), %vm1555_vm0, %v1556_v9  ;;  %v350_v10 = vld [vmem:[%s1859_s3 + $0x10] sm:$0xff] (!%p283_p2)  ;;  %v351_v11 = vld [vmem:[%s1859_s3 + $0x18] sm:$0xff] (!%p283_p2)  ;;  %1315 = vmatprep.mubr.msk.f32.mxu0 (!%p283_p2), %vm1555_vm0, %v1556_v9  ;;  %v1419_v12 = vpack.c.bf16 (!%p283_p2), %v355_v7, %v354_v6  ;;  %v357_v14 = vld [vmem:[%s1861_s5] sm:$0xff] (!%p283_p2)  ;;  %v1727_v42 = vshrl.u32 (!%p283_p2), %v393_v41, 7  ;;  %vm980_vm2 = vcmask (!%p283_p2), 1043456  }
   0x8   : > { %1417 = vmatpush3.bf16.msra.mxu1 (!%p283_p2), %v1416_v4  ;;  %v1413_v13 = vpack.c.bf16 (!%p283_p2), %v351_v11, %v350_v10  ;;  %v358_v15 = vld [vmem:[%s1861_s5 + $0x8] sm:$0xff] (!%p283_p2)  ;;  %v359_v19 = vld [vmem:[%s1861_s5 + $0x10] sm:$0xff] (!%p283_p2)  ;;  %v360_v20 = vld [vmem:[%s1861_s5 + $0x18] sm:$0xff] (!%p283_p2)  ;;  %vm700_vm3 = vcmask (!%p283_p2), 31744  }
   0x9   : > { %1411 = vmatpush3.bf16.msra.mxu0 (!%p283_p2), %v1410_v8  ;;  %1418 = vmatprep.subr.bf16.mxu1 (!%p283_p2), %v1554_v3  ;;  %v1422_v17 = vpack.c.bf16 (!%p283_p2), %v358_v15, %v357_v14  ;;  %v1425_v21 = vpack.c.bf16 (!%p283_p2), %v360_v20, %v359_v19  ;;  %v361_v22 = vld [vmem:[%s1861_s5 + $0x20] sm:$0xff] (!%p283_p2)  ;;  %v362_v23 = vld [vmem:[%s1861_s5 + $0x28] sm:$0xff] (!%p283_p2)  ;;  %v363_v25 = vld [vmem:[%s1861_s5 + $0x30] sm:$0xff] (!%p283_p2)  ;;  %v473_v43 = vsub.s32 (!%p283_p2), 1, %v1727_v42  ;;  %v395_v45 = vsub.s32 (!%p283_p2), 0, %v1727_v42 }
   0xa   : > { %1412 = vmatprep.subr.bf16.mxu0 (!%p283_p2), %v1554_v3  ;;  %v1428_v24 = vpack.c.bf16 (!%p283_p2), %v362_v23, %v361_v22  ;;  %v364_v26 = vld [vmem:[%s1861_s5 + $0x38] sm:$0xff] (!%p283_p2)  ;;  %v365_v28 = vld [vmem:[%s1861_s5 + $0x40] sm:$0xff] (!%p283_p2)  ;;  %v366_v29 = vld [vmem:[%s1861_s5 + $0x48] sm:$0xff] (!%p283_p2) }
   0xb   : > { %v1431_v27 = vpack.c.bf16 (!%p283_p2), %v364_v26, %v363_v25  ;;  %v1434_v30 = vpack.c.bf16 (!%p283_p2), %v366_v29, %v365_v28  ;;  %v367_v31 = vld [vmem:[%s1861_s5 + $0x50] sm:$0xff] (!%p283_p2)  ;;  %v368_v32 = vld [vmem:[%s1861_s5 + $0x58] sm:$0xff] (!%p283_p2)  ;;  %v369_v34 = vld [vmem:[%s1861_s5 + $0x60] sm:$0xff] (!%p283_p2) }
   0xc   : > { %1420 = vmatpush3.bf16.msra.mxu1 (!%p283_p2), %v1419_v12  ;;  %v1437_v33 = vpack.c.bf16 (!%p283_p2), %v368_v32, %v367_v31  ;;  %v370_v35 = vld [vmem:[%s1861_s5 + $0x68] sm:$0xff] (!%p283_p2)  ;;  %v371_v37 = vld [vmem:[%s1861_s5 + $0x70] sm:$0xff] (!%p283_p2)  ;;  %v372_v38 = vld [vmem:[%s1861_s5 + $0x78] sm:$0xff] (!%p283_p2) }
   0xd   : > { %s1866_s28 = smov (!%p327_p3, %s1239_s28), 1  ;;  %1414 = vmatpush3.bf16.msra.mxu0 %v1413_v13  ;;  %1369 = vmatprep.subr.mxu1 %v1556_v9  ;;  %v1440_v36 = vpack.c.bf16 %v370_v35, %v369_v34  ;;  %v1443_v39 = vpack.c.bf16 %v372_v38, %v371_v37  ;;  %v356_v44 = vld [vmem:[%s1860_s4] sm:$0x3] }
   0xe   : > { %s1245_s23 = sshll.u32 %s1866_s28, 2  ;;  %s1244_s11 = sshll.u32 %s1866_s28, 3  ;;  %1421 = vmatprep.subr.bf16.mxu0 %v1554_v3  ;;  %v474_v46 = vrot.slane %v356_v44, %v473_v43  ;;  %v396_v47 = vrot.slane %v356_v44, %v395_v45  ;;  %v1741_v54 = vld [vmem:[%s1862_s6] sm:$0x3] }
   0xf   : > { %s334_s10 = scalar_lea.vmem %s1857_s1, %s1245_s23  ;;  %s330_s14 = scalar_lea.vmem %s1856_s0, %s1244_s11  ;;  %v551_v55 = vrot.slane %v1741_v54, %v395_v45 }
  0x10   : > { %v391_v16 = vld [vmem:[%s334_s10] sm:$0xf]  ;;  %s338_s30 = scalar_lea.vmem %s1858_s2, %s1245_s23  ;;  %s1258_s13 = sshll.u32 %s1866_s28, 4 }
  0x11   : > { %v390_v18 = vld [vmem:[%s330_s14] sm:$0xff]  ;;  %1327 = vmatmul.mubr.msk.f32.vlgmr.msra.gmra.mrb[0].mxu1 %vm397_vm1, %v391_v16  ;;  %s1749_s16 = scalar_lea.vmem %s1864_s8, %s1258_s13  ;;  %s342_s13 = scalar_lea.vmem %s1863_s7, %s1244_s11 }
  0x12   : > { %1316 = vmatmul.mubr.msk.f32.vlgmr.msra.gmra.mrb[0].mxu0 %vm397_vm1, %v390_v18  ;;  %1371 = vmatprep.mubr.msk.f32.mxu1 %vm1555_vm0, %v1556_v9  ;;  %v392_v40 = vld [vmem:[%s338_s30] sm:$0xf] }
  0x13   : > { %1423 = vmatpush3.bf16.msra.mxu0 %v1422_v17  ;;  %1361 = vmatprep.mubr.msk.f32.mxu0 %vm1555_vm0, %v1556_v9 }
  0x14   : > { %1424 = vmatprep.subr.bf16.mxu0 %v1554_v3 }
  0x17   : > { %1426 = vmatpush3.bf16.msra.mxu0 %v1425_v21 }
  0x18   : > { %1427 = vmatprep.subr.bf16.mxu0 %v1554_v3 }
  0x1b   : > { %1429 = vmatpush3.bf16.msra.mxu0 %v1428_v24 }
  0x1c   : > { %1430 = vmatprep.subr.bf16.mxu0 %v1554_v3 }
  0x1f   : > { %1432 = vmatpush3.bf16.msra.mxu0 %v1431_v27 }
  0x20   : > { %1433 = vmatprep.subr.bf16.mxu0 %v1554_v3 }
  0x23   : > { %1435 = vmatpush3.bf16.msra.mxu0 %v1434_v30 }
  0x24   : > { %1436 = vmatprep.subr.bf16.mxu0 %v1554_v3 }
  0x27   : > { %1438 = vmatpush3.bf16.msra.mxu0 %v1437_v33 }
  0x28   : > { %1439 = vmatprep.subr.bf16.mxu0 %v1554_v3 }
  0x2b   : > { %1441 = vmatpush3.bf16.msra.mxu0 %v1440_v36 }
  0x2c   : > { %1442 = vmatprep.subr.bf16.mxu0 %v1554_v3 }
  0x2f   : > { %1444 = vmatpush3.bf16.msra.mxu0 %v1443_v39 }
  0x30   : > { %1364 = vmatprep.subr.mxu0 %v1556_v9 }
  0x32   : > { %1362 = vmatmul.mubr.f32.vlgmr.msra.gmra.mrb[2].mxu0 %v392_v40 }
  0x33   : > { %1366 = vmatprep.mubr.msk.f32.mxu0 %vm1555_vm0, %v1556_v9 }
  0xe4   : > { %v544_v48 = vpop.f32.mrb[0].mxu1 }
  0xe5   : > { %v545_v49 = vadd.f32 %v544_v48, %v474_v46  ;;  %v1328_v50 = vpop.f32.mrb[1].mxu1  ;;  %v467_v51 = vpop.f32.mrb[0].mxu0 }
  0xe6   : > { %v468_v52 = vadd.f32 %v467_v51, %v396_v47  ;;  %v1317_v53 = vpop.f32.mrb[1].mxu0 }
  0xe7   : > { %1365 = vmatpush3.xpose.msk.msra.mxu0 %vm397_vm1, %v545_v49 }
  0xea   : > { %1367 = vmatmul.mubr.msk.f32.vlgmr.msra.gmra.mrb[4].mxu0 %vm397_vm1, %v468_v52 }
 0x105   : > { %v618_v56 = vpop.f32.mrb[2].mxu0 }
 0x106   : > { %v619_v57 = vadd.f32 %v618_v56, %v551_v55  ;;  %v1363_v58 = vpop.f32.mrb[3].mxu0 }
 0x108   : > { %1370 = vmatpush3.msk.msra.mxu1 %vm980_vm2, %v619_v57 }
 0x109   : > { %1445 = vmatprep.subr.bf16.mxu1 %v1554_v3 }
 0x1bd   : > { %v694_v59 = vpop.f32.mrb[4].mxu0 }
 0x1be   : > { %v698_v60 = vmul.f32 0.23570226, %v694_v59  ;;  %v1368_v61 = vpop.f32.mrb[5].mxu0 }
 0x1c0   : > { %v699_v62 = vmul.f32 0.75, %v698_v60  ;;  %v702_v63 = vsel %vm700_vm3, %v698_v60, -inf }
 0x1c1   : > { %703 = vmax.xlane.f32.xlu0 %v702_v63 }
 0x1c2   : > { %701 = vst.msk [vmem:[%s1749_s16 + $0x8] sm:$0xff] %vm700_vm3, %v699_v62 }
 0x24e   : > { %v704_v0 = vpop.xlane.xlu0 %703 }
 0x24f   : > { %v705_v1 = vsub.f32 %v698_v60, %v704_v0 }
 0x251   : > { %v706_v2 = vmul.f32 1.442695, %v705_v1 }
 0x253   : > { %1480 = vpow2.f32 %v706_v2 }
 0x25d   : > { %v1481_v4 = vpop.eup %1480 }
 0x25e   : > { %v708_v5 = vsel %vm700_vm3, %v1481_v4, 0.0 }
 0x25f   : > { %709 = vadd.xlane.f32.xlu0 %v708_v5 }
 0x2ec   : > { %v710_v6 = vpop.xlane.xlu0 %709 }
 0x2ed   : > { %1482 = vlog2.f32 %v710_v6 }
 0x2f7   : > { %v1483_v7 = vpop.eup %1482 }
 0x2f8   : > { %v712_v8 = vmul.f32 0.6931472, %v1483_v7 }
 0x2fa   : > { %v713_v10 = vadd.f32 %v712_v8, %v704_v0 }
 0x2fc   : > { %v714_v11 = vsub.f32 %v698_v60, %v713_v10 }
 0x2fe   : > { %v715_v12 = vsel %vm700_vm3, %v714_v11, -inf }
 0x2ff   : > { %v716_v13 = vrot.slane %v715_v12, 4 }
 0x301   : > { %v717_v14 = vmax.f32 %v715_v12, %v716_v13 }
 0x303   : > { %v718_v15 = vrot.slane %v717_v14, 2 }
 0x305   : > { %v719_v16 = vmax.f32 %v717_v14, %v718_v15 }
 0x307   : > { %v720_v17 = vrot.slane %v719_v16, 1 }
 0x309   : > { %v721_v18 = vmax.f32 %v719_v16, %v720_v17 }
 0x30b   : > { %v722_v19 = vsub.f32 %v714_v11, %v721_v18 }
 0x30d   : > { %v723_v20 = vmul.f32 1.442695, %v722_v19 }
 0x30f   : > { %1484 = vpow2.f32 %v723_v20 }
 0x319   : > { %v1485_v21 = vpop.eup %1484 }
 0x31a   : > { %v725_v22 = vsel %vm700_vm3, %v1485_v21, 0.0 }
 0x31b   : > { %v726_v23 = vrot.slane %v725_v22, 4 }
 0x31d   : > { %v727_v24 = vadd.f32 %v726_v23, %v725_v22 }
 0x31f   : > { %v728_v25 = vrot.slane %v727_v24, 2 }
 0x321   : > { %v729_v26 = vadd.f32 %v728_v25, %v727_v24 }
 0x323   : > { %v730_v27 = vrot.slane %v729_v26, 1 }
 0x325   : > { %v731_v28 = vadd.f32 %v730_v27, %v729_v26 }
 0x327   : > { %1486 = vlog2.f32 %v731_v28 }
 0x331   : > { %v1487_v29 = vpop.eup %1486 }
 0x332   : > { %v733_v30 = vmul.f32 0.6931472, %v1487_v29 }
 0x334   : > { %v734_v31 = vadd.f32 %v733_v30, %v721_v18 }
 0x336   : > { %v735_v32 = vsub.f32 %v714_v11, %v734_v31 }
 0x338   : > { %v736_v33 = vsel %vm700_vm3, %v735_v32, -inf }
 0x339   : > { %737 = vmax.xlane.f32.xlu1 %v736_v33 }
 0x3c6   : > { %v738_v34 = vpop.xlane.xlu1 %737 }
 0x3c7   : > { %v739_v35 = vsub.f32 %v735_v32, %v738_v34 }
 0x3c9   : > { %v740_v36 = vmul.f32 1.442695, %v739_v35 }
 0x3cb   : > { %1488 = vpow2.f32 %v740_v36 }
 0x3d5   : > { %v1489_v37 = vpop.eup %1488 }
 0x3d6   : > { %v742_v38 = vsel %vm700_vm3, %v1489_v37, 0.0 }
 0x3d7   : > { %743 = vadd.xlane.f32.xlu1 %v742_v38 }
 0x464   : > { %v744_v39 = vpop.xlane.xlu1 %743 }
 0x465   : > { %1490 = vlog2.f32 %v744_v39 }
 0x46f   : > { %v1491_v40 = vpop.eup %1490 }
 0x470   : > { %v746_v41 = vmul.f32 0.6931472, %v1491_v40 }
 0x472   : > { %v747_v44 = vadd.f32 %v746_v41, %v738_v34 }
 0x474   : > { %v748_v45 = vsub.f32 %v735_v32, %v747_v44 }
 0x476   : > { %v749_v46 = vsel %vm700_vm3, %v748_v45, -inf }
 0x477   : > { %v750_v47 = vrot.slane %v749_v46, 4 }
 0x479   : > { %v751_v48 = vmax.f32 %v749_v46, %v750_v47 }
 0x47b   : > { %v752_v49 = vrot.slane %v751_v48, 2 }
 0x47d   : > { %v753_v50 = vmax.f32 %v751_v48, %v752_v49 }
 0x47f   : > { %v754_v51 = vrot.slane %v753_v50, 1 }
 0x481   : > { %v755_v52 = vmax.f32 %v753_v50, %v754_v51 }
 0x483   : > { %v756_v53 = vsub.f32 %v748_v45, %v755_v52 }
 0x485   : > { %v757_v55 = vmul.f32 1.442695, %v756_v53 }
 0x487   : > { %1492 = vpow2.f32 %v757_v55 }
 0x491   : > { %v1493_v56 = vpop.eup %1492 }
 0x492   : > { %v759_v57 = vsel %vm700_vm3, %v1493_v56, 0.0 }
 0x493   : > { %v760_v58 = vrot.slane %v759_v57, 4 }
 0x495   : > { %v761_v59 = vadd.f32 %v760_v58, %v759_v57 }
 0x497   : > { %v762_v60 = vrot.slane %v761_v59, 2 }
 0x499   : > { %v763_v61 = vadd.f32 %v762_v60, %v761_v59 }
 0x49b   : > { %v764_v62 = vrot.slane %v763_v61, 1 }
 0x49d   : > { %v765_v63 = vadd.f32 %v764_v62, %v763_v61 }
 0x49f   : > { %1494 = vlog2.f32 %v765_v63 }
 0x4a9   : > { %v1495_v0 = vpop.eup %1494 }
 0x4aa   : > { %v767_v1 = vmul.f32 0.6931472, %v1495_v0 }
 0x4ac   : > { %v768_v2 = vadd.f32 %v767_v1, %v755_v52 }
 0x4ae   : > { %v769_v4 = vsub.f32 %v748_v45, %v768_v2 }
 0x4b0   : > { %v770_v5 = vsel %vm700_vm3, %v769_v4, -inf }
 0x4b1   : > { %771 = vmax.xlane.f32.xlu0 %v770_v5 }
 0x53e   : > { %v772_v6 = vpop.xlane.xlu0 %771 }
 0x53f   : > { %v773_v7 = vsub.f32 %v769_v4, %v772_v6 }
 0x541   : > { %v774_v8 = vmul.f32 1.442695, %v773_v7 }
 0x543   : > { %1496 = vpow2.f32 %v774_v8 }
 0x54d   : > { %v1497_v10 = vpop.eup %1496 }
 0x54e   : > { %v776_v11 = vsel %vm700_vm3, %v1497_v10, 0.0 }
 0x54f   : > { %777 = vadd.xlane.f32.xlu1 %v776_v11 }
 0x5dc   : > { %v778_v12 = vpop.xlane.xlu1 %777 }
 0x5dd   : > { %1498 = vlog2.f32 %v778_v12 }
 0x5e7   : > { %v1499_v13 = vpop.eup %1498 }
 0x5e8   : > { %v780_v14 = vmul.f32 0.6931472, %v1499_v13 }
 0x5ea   : > { %v781_v15 = vadd.f32 %v780_v14, %v772_v6 }
 0x5ec   : > { %v782_v16 = vsub.f32 %v769_v4, %v781_v15 }
 0x5ee   : > { %v783_v17 = vsel %vm700_vm3, %v782_v16, -inf }
 0x5ef   : > { %v784_v18 = vrot.slane %v783_v17, 4 }
 0x5f1   : > { %v785_v19 = vmax.f32 %v783_v17, %v784_v18 }
 0x5f3   : > { %v786_v20 = vrot.slane %v785_v19, 2 }
 0x5f5   : > { %v787_v21 = vmax.f32 %v785_v19, %v786_v20 }
 0x5f7   : > { %v788_v22 = vrot.slane %v787_v21, 1 }
 0x5f9   : > { %v789_v23 = vmax.f32 %v787_v21, %v788_v22 }
 0x5fb   : > { %v790_v24 = vsub.f32 %v782_v16, %v789_v23 }
 0x5fd   : > { %v791_v25 = vmul.f32 1.442695, %v790_v24 }
 0x5ff   : > { %1500 = vpow2.f32 %v791_v25 }
 0x609   : > { %v1501_v26 = vpop.eup %1500 }
 0x60a   : > { %v793_v27 = vsel %vm700_vm3, %v1501_v26, 0.0 }
 0x60b   : > { %v794_v28 = vrot.slane %v793_v27, 4 }
 0x60d   : > { %v795_v29 = vadd.f32 %v794_v28, %v793_v27 }
 0x60f   : > { %v796_v30 = vrot.slane %v795_v29, 2 }
 0x611   : > { %v797_v31 = vadd.f32 %v796_v30, %v795_v29 }
 0x613   : > { %v798_v32 = vrot.slane %v797_v31, 1 }
 0x615   : > { %v799_v33 = vadd.f32 %v798_v32, %v797_v31 }
 0x617   : > { %1502 = vlog2.f32 %v799_v33 }
 0x621   : > { %v1503_v34 = vpop.eup %1502 }
 0x622   : > { %v801_v35 = vmul.f32 0.6931472, %v1503_v34 }
 0x624   : > { %v802_v36 = vadd.f32 %v801_v35, %v789_v23 }
 0x626   : > { %v803_v37 = vsub.f32 %v782_v16, %v802_v36 }
 0x628   : > { %v804_v38 = vsel %vm700_vm3, %v803_v37, -inf }
 0x629   : > { %805 = vmax.xlane.f32.xlu0 %v804_v38 }
 0x6b6   : > { %v806_v39 = vpop.xlane.xlu0 %805 }
 0x6b7   : > { %v807_v40 = vsub.f32 %v803_v37, %v806_v39 }
 0x6b9   : > { %v808_v41 = vmul.f32 1.442695, %v807_v40 }
 0x6bb   : > { %1504 = vpow2.f32 %v808_v41 }
 0x6c5   : > { %v1505_v44 = vpop.eup %1504 }
 0x6c6   : > { %v810_v45 = vsel %vm700_vm3, %v1505_v44, 0.0 }
 0x6c7   : > { %811 = vadd.xlane.f32.xlu1 %v810_v45 }
 0x754   : > { %v812_v46 = vpop.xlane.xlu1 %811 }
 0x755   : > { %1506 = vlog2.f32 %v812_v46 }
 0x75f   : > { %v1507_v47 = vpop.eup %1506 }
 0x760   : > { %v814_v48 = vmul.f32 0.6931472, %v1507_v47 }
 0x762   : > { %v815_v49 = vadd.f32 %v814_v48, %v806_v39 }
 0x764   : > { %v816_v50 = vsub.f32 %v803_v37, %v815_v49 }
 0x766   : > { %v817_v51 = vsel %vm700_vm3, %v816_v50, -inf }
 0x767   : > { %v818_v52 = vrot.slane %v817_v51, 4 }
 0x769   : > { %v819_v53 = vmax.f32 %v817_v51, %v818_v52 }
 0x76b   : > { %v820_v55 = vrot.slane %v819_v53, 2 }
 0x76d   : > { %v821_v56 = vmax.f32 %v819_v53, %v820_v55 }
 0x76f   : > { %v822_v57 = vrot.slane %v821_v56, 1 }
 0x771   : > { %v823_v58 = vmax.f32 %v821_v56, %v822_v57 }
 0x773   : > { %v824_v59 = vsub.f32 %v816_v50, %v823_v58 }
 0x775   : > { %v825_v60 = vmul.f32 1.442695, %v824_v59 }
 0x777   : > { %1508 = vpow2.f32 %v825_v60 }
 0x781   : > { %v1509_v61 = vpop.eup %1508 }
 0x782   : > { %v827_v62 = vsel %vm700_vm3, %v1509_v61, 0.0 }
 0x783   : > { %v828_v63 = vrot.slane %v827_v62, 4 }
 0x785   : > { %v829_v0 = vadd.f32 %v828_v63, %v827_v62 }
 0x787   : > { %v830_v1 = vrot.slane %v829_v0, 2 }
 0x789   : > { %v831_v2 = vadd.f32 %v830_v1, %v829_v0 }
 0x78b   : > { %v832_v4 = vrot.slane %v831_v2, 1 }
 0x78d   : > { %v833_v5 = vadd.f32 %v832_v4, %v831_v2 }
 0x78f   : > { %1510 = vlog2.f32 %v833_v5 }
 0x799   : > { %v1511_v6 = vpop.eup %1510 }
 0x79a   : > { %v835_v7 = vmul.f32 0.6931472, %v1511_v6 }
 0x79c   : > { %v836_v8 = vadd.f32 %v835_v7, %v823_v58 }
 0x79e   : > { %v837_v10 = vsub.f32 %v816_v50, %v836_v8 }
 0x7a0   : > { %v838_v11 = vsel %vm700_vm3, %v837_v10, -inf }
 0x7a1   : > { %839 = vmax.xlane.f32.xlu0 %v838_v11 }
 0x82e   : > { %v840_v12 = vpop.xlane.xlu0 %839 }
 0x82f   : > { %v841_v13 = vsub.f32 %v837_v10, %v840_v12 }
 0x831   : > { %v842_v14 = vmul.f32 1.442695, %v841_v13 }
 0x833   : > { %1512 = vpow2.f32 %v842_v14 }
 0x83d   : > { %v1513_v15 = vpop.eup %1512 }
 0x83e   : > { %v844_v16 = vsel %vm700_vm3, %v1513_v15, 0.0 }
 0x83f   : > { %845 = vadd.xlane.f32.xlu1 %v844_v16 }
 0x8cc   : > { %v846_v17 = vpop.xlane.xlu1 %845 }
 0x8cd   : > { %1514 = vlog2.f32 %v846_v17 }
 0x8d7   : > { %v1515_v18 = vpop.eup %1514 }
 0x8d8   : > { %v848_v19 = vmul.f32 0.6931472, %v1515_v18 }
 0x8da   : > { %v849_v20 = vadd.f32 %v848_v19, %v840_v12 }
 0x8dc   : > { %v850_v21 = vsub.f32 %v837_v10, %v849_v20 }
 0x8de   : > { %v851_v22 = vsel %vm700_vm3, %v850_v21, -inf }
 0x8df   : > { %v852_v23 = vrot.slane %v851_v22, 4 }
 0x8e1   : > { %v853_v24 = vmax.f32 %v851_v22, %v852_v23 }
 0x8e3   : > { %v854_v25 = vrot.slane %v853_v24, 2 }
 0x8e5   : > { %v855_v26 = vmax.f32 %v853_v24, %v854_v25 }
 0x8e7   : > { %v856_v27 = vrot.slane %v855_v26, 1 }
 0x8e9   : > { %v857_v28 = vmax.f32 %v855_v26, %v856_v27 }
 0x8eb   : > { %v858_v29 = vsub.f32 %v850_v21, %v857_v28 }
 0x8ed   : > { %v859_v30 = vmul.f32 1.442695, %v858_v29 }
 0x8ef   : > { %1516 = vpow2.f32 %v859_v30 }
 0x8f9   : > { %v1517_v31 = vpop.eup %1516 }
 0x8fa   : > { %v861_v32 = vsel %vm700_vm3, %v1517_v31, 0.0 }
 0x8fb   : > { %v862_v33 = vrot.slane %v861_v32, 4 }
 0x8fd   : > { %v863_v34 = vadd.f32 %v862_v33, %v861_v32 }
 0x8ff   : > { %v864_v35 = vrot.slane %v863_v34, 2 }
 0x901   : > { %v865_v36 = vadd.f32 %v864_v35, %v863_v34 }
 0x903   : > { %v866_v37 = vrot.slane %v865_v36, 1 }
 0x905   : > { %v867_v38 = vadd.f32 %v866_v37, %v865_v36 }
 0x907   : > { %1518 = vlog2.f32 %v867_v38 }
 0x911   : > { %v1519_v39 = vpop.eup %1518 }
 0x912   : > { %v869_v40 = vmul.f32 0.6931472, %v1519_v39 }
 0x914   : > { %v870_v41 = vadd.f32 %v869_v40, %v857_v28 }
 0x916   : > { %v871_v44 = vsub.f32 %v850_v21, %v870_v41 }
 0x918   : > { %v872_v45 = vsel %vm700_vm3, %v871_v44, -inf }
 0x919   : > { %873 = vmax.xlane.f32.xlu0 %v872_v45 }
 0x9a6   : > { %v874_v46 = vpop.xlane.xlu0 %873 }
 0x9a7   : > { %v875_v47 = vsub.f32 %v871_v44, %v874_v46 }
 0x9a9   : > { %v876_v48 = vmul.f32 1.442695, %v875_v47 }
 0x9ab   : > { %1520 = vpow2.f32 %v876_v48 }
 0x9b5   : > { %v1521_v49 = vpop.eup %1520 }
 0x9b6   : > { %v878_v50 = vsel %vm700_vm3, %v1521_v49, 0.0 }
 0x9b7   : > { %879 = vadd.xlane.f32.xlu1 %v878_v50 }
 0xa44   : > { %v880_v51 = vpop.xlane.xlu1 %879 }
 0xa45   : > { %1522 = vlog2.f32 %v880_v51 }
 0xa4f   : > { %v1523_v52 = vpop.eup %1522 }
 0xa50   : > { %v882_v53 = vmul.f32 0.6931472, %v1523_v52 }
 0xa52   : > { %v883_v55 = vadd.f32 %v882_v53, %v874_v46 }
 0xa54   : > { %v884_v56 = vsub.f32 %v871_v44, %v883_v55 }
 0xa56   : > { %v885_v57 = vsel %vm700_vm3, %v884_v56, -inf }
 0xa57   : > { %v886_v58 = vrot.slane %v885_v57, 4 }
 0xa59   : > { %v887_v59 = vmax.f32 %v885_v57, %v886_v58 }
 0xa5b   : > { %v888_v60 = vrot.slane %v887_v59, 2 }
 0xa5d   : > { %v889_v61 = vmax.f32 %v887_v59, %v888_v60 }
 0xa5f   : > { %v890_v62 = vrot.slane %v889_v61, 1 }
 0xa61   : > { %v891_v63 = vmax.f32 %v889_v61, %v890_v62 }
 0xa63   : > { %v892_v0 = vsub.f32 %v884_v56, %v891_v63 }
 0xa65   : > { %v893_v1 = vmul.f32 1.442695, %v892_v0 }
 0xa67   : > { %1524 = vpow2.f32 %v893_v1 }
 0xa71   : > { %v1525_v2 = vpop.eup %1524 }
 0xa72   : > { %v895_v4 = vsel %vm700_vm3, %v1525_v2, 0.0 }
 0xa73   : > { %v896_v5 = vrot.slane %v895_v4, 4 }
 0xa75   : > { %v897_v6 = vadd.f32 %v896_v5, %v895_v4 }
 0xa77   : > { %v898_v7 = vrot.slane %v897_v6, 2 }
 0xa79   : > { %v899_v8 = vadd.f32 %v898_v7, %v897_v6 }
 0xa7b   : > { %v900_v10 = vrot.slane %v899_v8, 1 }
 0xa7d   : > { %v901_v11 = vadd.f32 %v900_v10, %v899_v8 }
 0xa7f   : > { %1526 = vlog2.f32 %v901_v11 }
 0xa89   : > { %v1527_v12 = vpop.eup %1526 }
 0xa8a   : > { %v903_v13 = vmul.f32 0.6931472, %v1527_v12 }
 0xa8c   : > { %v904_v14 = vadd.f32 %v903_v13, %v891_v63 }
 0xa8e   : > { %v905_v15 = vsub.f32 %v884_v56, %v904_v14 }
 0xa90   : > { %v906_v16 = vsel %vm700_vm3, %v905_v15, -inf }
 0xa91   : > { %907 = vmax.xlane.f32.xlu0 %v906_v16 }
 0xb1e   : > { %v908_v17 = vpop.xlane.xlu0 %907 }
 0xb1f   : > { %v909_v18 = vsub.f32 %v905_v15, %v908_v17 }
 0xb21   : > { %v910_v19 = vmul.f32 1.442695, %v909_v18 }
 0xb23   : > { %1528 = vpow2.f32 %v910_v19 }
 0xb2d   : > { %v1529_v20 = vpop.eup %1528 }
 0xb2e   : > { %v912_v21 = vsel %vm700_vm3, %v1529_v20, 0.0 }
 0xb2f   : > { %913 = vadd.xlane.f32.xlu1 %v912_v21 }
 0xbbc   : > { %v914_v22 = vpop.xlane.xlu1 %913 }
 0xbbd   : > { %1530 = vlog2.f32 %v914_v22  ;;  %v373_v22 = vld [vmem:[%s1861_s5 + $0x80] sm:$0xff] }
 0xbc7   : > { %v1531_v23 = vpop.eup %1530 }
 0xbc8   : > { %v916_v24 = vmul.f32 0.6931472, %v1531_v23  ;;  %v374_v23 = vld [vmem:[%s1861_s5 + $0x88] sm:$0xff] }
 0xbca   : > { %v917_v25 = vadd.f32 %v916_v24, %v908_v17  ;;  %v1446_v24 = vpack.c.bf16 %v374_v23, %v373_v22 }
 0xbcc   : > { %v918_v26 = vsub.f32 %v905_v15, %v917_v25  ;;  %v375_v25 = vld [vmem:[%s1861_s5 + $0x90] sm:$0xff] }
 0xbce   : > { %v919_v27 = vsel %vm700_vm3, %v918_v26, -inf }
 0xbcf   : > { %v920_v28 = vrot.slane %v919_v27, 4 }
 0xbd1   : > { %v921_v29 = vmax.f32 %v919_v27, %v920_v28 }
 0xbd3   : > { %v922_v30 = vrot.slane %v921_v29, 2 }
 0xbd5   : > { %v923_v31 = vmax.f32 %v921_v29, %v922_v30  ;;  %v377_v29 = vld [vmem:[%s1861_s5 + $0xa0] sm:$0xff]  ;;  %v378_v30 = vld [vmem:[%s1861_s5 + $0xa8] sm:$0xff] }
 0xbd7   : > { %v924_v32 = vrot.slane %v923_v31, 1 }
 0xbd9   : > { %v925_v33 = vmax.f32 %v923_v31, %v924_v32  ;;  %v1452_v31 = vpack.c.bf16 %v378_v30, %v377_v29  ;;  %v379_v32 = vld [vmem:[%s1861_s5 + $0xb0] sm:$0xff] }
 0xbdb   : > { %v926_v34 = vsub.f32 %v918_v26, %v925_v33 }
 0xbdd   : > { %v927_v35 = vmul.f32 1.442695, %v926_v34  ;;  %v381_v34 = vld [vmem:[%s1861_s5 + $0xc0] sm:$0xff] }
 0xbdf   : > { %1532 = vpow2.f32 %v927_v35  ;;  %v382_v35 = vld [vmem:[%s1861_s5 + $0xc8] sm:$0xff] }
 0xbe9   : > { %v1533_v36 = vpop.eup %1532 }
 0xbea   : > { %v929_v37 = vsel %vm700_vm3, %v1533_v36, 0.0  ;;  %v1458_v36 = vpack.c.bf16 %v382_v35, %v381_v34 }
 0xbeb   : > { %v930_v38 = vrot.slane %v929_v37, 4 }
 0xbed   : > { %v931_v39 = vadd.f32 %v930_v38, %v929_v37  ;;  %v383_v37 = vld [vmem:[%s1861_s5 + $0xd0] sm:$0xff]  ;;  %v384_v38 = vld [vmem:[%s1861_s5 + $0xd8] sm:$0xff] }
 0xbef   : > { %v932_v40 = vrot.slane %v931_v39, 2 }
 0xbf1   : > { %v933_v41 = vadd.f32 %v932_v40, %v931_v39  ;;  %v1461_v39 = vpack.c.bf16 %v384_v38, %v383_v37  ;;  %v385_v40 = vld [vmem:[%s1861_s5 + $0xe0] sm:$0xff] }
 0xbf3   : > { %v934_v44 = vrot.slane %v933_v41, 1 }
 0xbf5   : > { %v935_v45 = vadd.f32 %v934_v44, %v933_v41  ;;  %v386_v41 = vld [vmem:[%s1861_s5 + $0xe8] sm:$0xff] }
 0xbf6   : > { %v1464_v44 = vpack.c.bf16 %v386_v41, %v385_v40 }
 0xbf7   : > { %1534 = vlog2.f32 %v935_v45  ;;  %v387_v45 = vld [vmem:[%s1861_s5 + $0xf0] sm:$0xff] }
 0xc01   : > { %v1535_v46 = vpop.eup %1534 }
 0xc02   : > { %v937_v47 = vmul.f32 0.6931472, %v1535_v46  ;;  %v388_v46 = vld [vmem:[%s1861_s5 + $0xf8] sm:$0xff] }
 0xc04   : > { %v938_v48 = vadd.f32 %v937_v47, %v925_v33  ;;  %v1467_v47 = vpack.c.bf16 %v388_v46, %v387_v45 }
 0xc06   : > { %v939_v49 = vsub.f32 %v918_v26, %v938_v48  ;;  %v376_v26 = vld [vmem:[%s1861_s5 + $0x98] sm:$0xff] }
 0xc07   : > { %v1449_v28 = vpack.c.bf16 %v376_v26, %v375_v25 }
 0xc08   : > { %v940_v50 = vsel %vm700_vm3, %v939_v49, -inf }
 0xc09   : > { %941 = vmax.xlane.f32.xlu0 %v940_v50  ;;  %v1057_v50 = vrot.slane %v1741_v54, %v473_v43 }
 0xc96   : > { %v942_v51 = vpop.xlane.xlu0 %941 }
 0xc97   : > { %v943_v52 = vsub.f32 %v939_v49, %v942_v51 }
 0xc99   : > { %v944_v53 = vmul.f32 1.442695, %v943_v52 }
 0xc9b   : > { %1536 = vpow2.f32 %v944_v53 }
 0xca5   : > { %v1537_v55 = vpop.eup %1536 }
 0xca6   : > { %v946_v56 = vsel %vm700_vm3, %v1537_v55, 0.0 }
 0xca7   : > { %947 = vadd.xlane.f32.xlu1 %v946_v56 }
 0xd34   : > { %v948_v57 = vpop.xlane.xlu1 %947 }
 0xd35   : > { %1538 = vlog2.f32 %v948_v57 }
 0xd3f   : > { %v1539_v58 = vpop.eup %1538 }
 0xd40   : > { %v950_v59 = vmul.f32 0.6931472, %v1539_v58 }
 0xd42   : > { %v951_v60 = vadd.f32 %v950_v59, %v942_v51 }
 0xd44   : > { %v952_v61 = vsub.f32 %v939_v49, %v951_v60 }
 0xd46   : > { %v953_v62 = vsel %vm700_vm3, %v952_v61, -inf }
 0xd47   : > { %v954_v63 = vrot.slane %v953_v62, 4 }
 0xd49   : > { %v955_v0 = vmax.f32 %v953_v62, %v954_v63 }
 0xd4b   : > { %v956_v1 = vrot.slane %v955_v0, 2 }
 0xd4d   : > { %v957_v2 = vmax.f32 %v955_v0, %v956_v1 }
 0xd4f   : > { %v958_v4 = vrot.slane %v957_v2, 1 }
 0xd51   : > { %v959_v5 = vmax.f32 %v957_v2, %v958_v4 }
 0xd53   : > { %v960_v6 = vsub.f32 %v952_v61, %v959_v5 }
 0xd55   : > { %v961_v7 = vmul.f32 1.442695, %v960_v6 }
 0xd57   : > { %1540 = vpow2.f32 %v961_v7 }
 0xd61   : > { %v1541_v8 = vpop.eup %1540 }
 0xd62   : > { %v963_v10 = vsel %vm700_vm3, %v1541_v8, 0.0 }
 0xd63   : > { %v964_v11 = vrot.slane %v963_v10, 4 }
 0xd65   : > { %v965_v12 = vadd.f32 %v964_v11, %v963_v10 }
 0xd67   : > { %v966_v13 = vrot.slane %v965_v12, 2 }
 0xd69   : > { %v967_v14 = vadd.f32 %v966_v13, %v965_v12 }
 0xd6b   : > { %v968_v15 = vrot.slane %v967_v14, 1 }
 0xd6d   : > { %v969_v16 = vadd.f32 %v968_v15, %v967_v14 }
 0xd6f   : > { %1542 = vlog2.f32 %v969_v16 }
 0xd79   : > { %v1543_v17 = vpop.eup %1542 }
 0xd7a   : > { %v971_v18 = vmul.f32 0.6931472, %v1543_v17 }
 0xd7c   : > { %v972_v19 = vadd.f32 %v971_v18, %v959_v5 }
 0xd7e   : > { %v973_v20 = vsub.f32 %v952_v61, %v972_v19 }
 0xd80   : > { %v974_v21 = vmul.f32 1.442695, %v973_v20 }
 0xd82   : > { %1544 = vpow2.f32 %v974_v21 }
 0xd8c   : > { %v1545_v27 = vpop.eup %1544 }
 0xd8d   : > { %976 = vst.msk [vmem:[%s1749_s16] sm:$0xff] %vm700_vm3, %v1545_v27  ;;  %1372 = vmatmul.mubr.msk.f32.vlgmr.msra.gmra.mrb[2].mxu1 %vm700_vm3, %v1545_v27 }
 0xd8e   : > { %1447 = vmatpush3.bf16.msra.mxu1 %v1446_v24  ;;  %1406 = vmatprep.mubr.msk.f32.mxu1 %vm1555_vm0, %v1556_v9  ;;  %v380_v9 = vld [vmem:[%s1861_s5 + $0xb8] sm:$0xff] }
 0xd8f   : > { %1448 = vmatprep.subr.bf16.mxu1 %v1554_v3  ;;  %v1455_v33 = vpack.c.bf16 %v380_v9, %v379_v32 }
 0xd92   : > { %1450 = vmatpush3.bf16.msra.mxu1 %v1449_v28 }
 0xd93   : > { %1451 = vmatprep.subr.bf16.mxu1 %v1554_v3 }
 0xd96   : > { %1453 = vmatpush3.bf16.msra.mxu1 %v1452_v31 }
 0xd97   : > { %1454 = vmatprep.subr.bf16.mxu1 %v1554_v3 }
 0xd9a   : > { %1456 = vmatpush3.bf16.msra.mxu1 %v1455_v33 }
 0xd9b   : > { %1457 = vmatprep.subr.bf16.mxu1 %v1554_v3 }
 0xd9e   : > { %1459 = vmatpush3.bf16.msra.mxu1 %v1458_v36 }
 0xd9f   : > { %1460 = vmatprep.subr.bf16.mxu1 %v1554_v3 }
 0xda2   : > { %1462 = vmatpush3.bf16.msra.mxu1 %v1461_v39 }
 0xda3   : > { %1463 = vmatprep.subr.bf16.mxu1 %v1554_v3 }
 0xda6   : > { %1465 = vmatpush3.bf16.msra.mxu1 %v1464_v44 }
 0xda7   : > { %1466 = vmatprep.subr.bf16.mxu1 %v1554_v3 }
 0xdaa   : > { %1468 = vmatpush3.bf16.msra.mxu1 %v1467_v47 }
 0xe60   : > { %v1050_v48 = vpop.f32.mrb[2].mxu1 }
 0xe61   : > { %v1373_v49 = vpop.f32.mrb[3].mxu1  ;;  %1407 = vmatmul.mubr.f32.vlgmr.msra.gmra.mrb[4].mxu1 %v1050_v48 }
 0xf34   : > { %v1124_v51 = vpop.f32.mrb[4].mxu1 }
 0xf35   : > { %v1125_v52 = vadd.f32 %v1124_v51, %v1057_v50  ;;  %v1408_v53 = vpop.f32.mrb[5].mxu1 }
 0xf37   : > { %1128 = vst [vmem:[%s342_s13] sm:$0xff] %v1125_v52 }
 0xf38 PF: > { %s19_s27 = sadd.s32 1, %s1552_s27  }
 0xf39   : > { %p16_p4 = scmp.ge.s32.totalorder %s19_s27, 4  }
 0xf3b   :  { %18 = sbr.rel (!%p16_p4) target bundleno = 1 (0x1), region = 96 }

</bundles_post_ra>
